<compile_context>
chip_gen: v7x
topology: tpu7x:2x2x1
jax: 0.10.0
libtpu: 0.0.40
codegen_flags: <defaults>
</compile_context>

<pallas_src>
import functools
import math

import jax
import jax.numpy as jnp
from jax.experimental import pallas as pl
from jax.experimental.pallas import tpu as pltpu


def _cdiv(a, b):
    return -(-a // b)


def _round_up(x, m):
    return _cdiv(x, m) * m


# ---------------------------------------------------------------------------
# Kernels
# ---------------------------------------------------------------------------

def _pixmha_fused_kernel(qk_ref, v_ref, o_ref):
    """Full-S tile: softmax over axis 0 (sublanes) fused with the V scale."""
    q = qk_ref[...].astype(jnp.float32)
    # max(-q) == -min(q): skips materializing the negated (S, tm) temporary.
    mn = jnp.min(q, axis=0, keepdims=True)
    e = jnp.exp(mn - q)                              # == exp(-q - max(-q))
    s = jnp.sum(e, axis=0, keepdims=True)
    inv = pl.reciprocal(s, approx=False)             # exact; only (1, tm) elems
    o_ref[...] = (v_ref[...].astype(jnp.float32) * e * inv).astype(o_ref.dtype)


def _pixmha_two_pass_kernel(qk_ref, v_ref, o_ref, m_run, s_run, *, S, ts):
    """Large-S fallback: online-softmax stats (pass 0) then scale/store (pass 1)."""
    p = pl.program_id(1)          # 0 = stats pass over S-tiles, 1 = output pass
    j = pl.program_id(2)          # S-tile index within the pass

    q = qk_ref[...].astype(jnp.float32)
    rows = j * ts + jax.lax.broadcasted_iota(jnp.int32, (ts, 1), 0)
    w = jnp.where(rows < S, -q, -jnp.inf)            # attn_wts = -inp_qk, ragged rows masked

    @pl.when(jnp.logical_and(p == 0, j == 0))
    def _():
        m_run[...] = jnp.full_like(m_run, -jnp.inf)
        s_run[...] = jnp.zeros_like(s_run)

    @pl.when(p == 0)
    def _():
        tile_max = jnp.max(w, axis=0, keepdims=True)
        new_m = jnp.maximum(m_run[...], tile_max)
        s_run[...] = (s_run[...] * jnp.exp(m_run[...] - new_m)
                      + jnp.sum(jnp.exp(w - new_m), axis=0, keepdims=True))
        m_run[...] = new_m

    @pl.when(p == 1)
    def _():
        e = jnp.exp(w - m_run[...])
        inv = pl.reciprocal(s_run[...], approx=False)
        o_ref[...] = (v_ref[...].astype(jnp.float32) * e * inv).astype(o_ref.dtype)


# ---------------------------------------------------------------------------
# Tiling plan
# ---------------------------------------------------------------------------

def _plan(S, M, in_isz, out_isz, *, tile_m=None, tile_s=None, force_two_pass=False):
    try:
        cap = pltpu.get_tpu_info().vmem_capacity_bytes   # 128 MiB v5e/v6e, 64 MiB v7x
    except Exception:
        cap = 64 << 20                                   # conservative (v7x-safe) fallback
    vmem_limit = int(min(cap * 3 // 4, 96 << 20))        # 48 MiB v7x, 96 MiB v5e/v6e
    budget = int(0.8 * vmem_limit)                       # headroom for Mosaic internals

    def _spad(n, itemsize):
        # second-to-last dim pads to the vreg sublane tile (8 f32 / 16 bf16 / 32 int8)
        return _round_up(n, 8 * max(1, 4 // itemsize))

    # Per lane-column VMEM cost of a full-S fused tile: 2 inputs x 2 pipeline
    # buffers + output x 2 buffers + ~2 live f32 (S, tm) temporaries.
    per_col = (2 * 2 * _spad(S, in_isz) * in_isz
               + 2 * _spad(S, out_isz) * out_isz
               + 2 * _round_up(S, 8) * 4)
    tm_fit = max(budget // max(per_col, 1), 1)

    # Lane floor keeps each strided DMA row >= ~512 B.
    lane_floor = 128 * max(1, 4 // in_isz)               # 128 f32 / 256 bf16 / 512 int8

    if force_two_pass or (M >= 128 and tm_fit < 128):
        # Full-S column tiles no longer fit VMEM: online-softmax over S-tiles.
        ts_tile = 8 * max(1, 4 // in_isz)
        tm = min(lane_floor, _round_up(M, 128)) if M >= 128 else M
        per_row = tm * (2 * 2 * in_isz + 2 * out_isz + 2 * 4)
        ts = max((budget // max(per_row, 1)) // ts_tile * ts_tile, ts_tile)
        if tile_s is not None:
            ts = max(_round_up(int(tile_s), ts_tile), ts_tile)
        ts = min(ts, _round_up(S, ts_tile))
        return dict(mode="two_pass", tm=int(tm), ts=int(ts), vmem_limit=vmem_limit)

    # ---- fused (full-S) path ----
    tm = min(tm_fit, 65536)
    # Cap the tile so the grid has >=8 (even) steps when M allows: overlaps DMA
    # with compute and splits evenly across v7x's two TensorCores.
    if M >= 8 * lane_floor:
        tm = min(tm, _round_up(_cdiv(M, 8), 128))
    elif M >= 4 * 128:
        tm = min(tm, _round_up(_cdiv(M, 4), 128))
    tm = max(tm, min(lane_floor, tm_fit))
    tm = max((tm // 128) * 128, 128)
    if tile_m is not None:
        # Manual override, re-validated against this chip's VMEM budget.
        tm = max(min(int(tile_m), max(tm_fit, 128)), 128)
        tm = max((tm // 128) * 128, 128)
    if M < 128 or tm >= M:
        tm = M                                           # single full-width block
    return dict(mode="fused", tm=int(tm), ts=int(S), vmem_limit=vmem_limit)


# ---------------------------------------------------------------------------
# pallas_call wrappers
# ---------------------------------------------------------------------------

def _call_fused(qk2, v2, out_dtype, S, M, plan):
    tm = plan["tm"]
    grid = (_cdiv(M, tm),)
    in_isz = jnp.dtype(qk2.dtype).itemsize
    out_isz = jnp.dtype(out_dtype).itemsize
    cost = pl.CostEstimate(
        flops=5 * S * M,
        transcendentals=S * M,
        bytes_accessed=S * M * (2 * in_isz + out_isz),
    )
    return pl.pallas_call(
        _pixmha_fused_kernel,
        out_shape=jax.ShapeDtypeStruct((S, M), out_dtype),
        grid_spec=pltpu.PrefetchScalarGridSpec(
            num_scalar_prefetch=0,
            grid=grid,
            in_specs=[pl.BlockSpec((S, tm), lambda i: (0, i)),
                      pl.BlockSpec((S, tm), lambda i: (0, i))],
            out_specs=pl.BlockSpec((S, tm), lambda i: (0, i)),
        ),
        compiler_params=pltpu.CompilerParams(
            dimension_semantics=("parallel",),
            vmem_limit_bytes=plan["vmem_limit"],
        ),
        cost_estimate=cost,
    )(qk2, v2)


def _call_two_pass(qk2, v2, out_dtype, S, M, plan):
    tm, ts = plan["tm"], plan["ts"]
    n_m, n_s = _cdiv(M, tm), _cdiv(S, ts)
    grid = (n_m, 2, n_s)                                 # (lane tiles, pass, S tiles)
    kernel = functools.partial(_pixmha_two_pass_kernel, S=S, ts=ts)
    in_isz = jnp.dtype(qk2.dtype).itemsize
    out_isz = jnp.dtype(out_dtype).itemsize
    cost = pl.CostEstimate(
        flops=8 * S * M,
        transcendentals=2 * S * M,
        bytes_accessed=S * M * (3 * in_isz + out_isz),   # qk read twice
    )
    return pl.pallas_call(
        kernel,
        out_shape=jax.ShapeDtypeStruct((S, M), out_dtype),
        grid_spec=pltpu.PrefetchScalarGridSpec(
            num_scalar_prefetch=0,
            grid=grid,
            in_specs=[pl.BlockSpec((ts, tm), lambda i, p, j: (j, i)),
                      pl.BlockSpec((ts, tm), lambda i, p, j: (j * p, i))],
            out_specs=pl.BlockSpec((ts, tm), lambda i, p, j: (j * p, i)),
            scratch_shapes=[pltpu.VMEM((1, tm), jnp.float32),   # running max of -qk
                            pltpu.VMEM((1, tm), jnp.float32)],  # running sum of exp
        ),
        compiler_params=pltpu.CompilerParams(
            dimension_semantics=("parallel", "arbitrary", "arbitrary"),
            vmem_limit_bytes=plan["vmem_limit"],
        ),
        cost_estimate=cost,
    )(qk2, v2)


def pixmha_forward(inp_qk, inp_v, *, tile_m=None, tile_s=None, force_two_pass=False):
    """Pallas implementation of PixMHA.forward: inp_v * softmax(-inp_qk, axis=0)."""
    assert inp_qk.shape == inp_v.shape, "inp_qk and inp_v must have the same shape"
    orig_shape = inp_qk.shape
    S = int(orig_shape[0])
    M = int(math.prod(orig_shape[1:])) if len(orig_shape) > 1 else 1

    # Match PyTorch type promotion: softmax keeps qk's dtype, then * v promotes.
    out_dtype = jnp.promote_types(inp_qk.dtype, inp_v.dtype)

    qk2 = inp_qk.reshape(S, M)
    v2 = inp_v.reshape(S, M)

    plan = _plan(S, M,
                 jnp.dtype(inp_qk.dtype).itemsize,
                 jnp.dtype(out_dtype).itemsize,
                 tile_m=tile_m, tile_s=tile_s, force_two_pass=force_two_pass)

    if plan["mode"] == "fused":
        out2 = _call_fused(qk2, v2, out_dtype, S, M, plan)
    else:
        out2 = _call_two_pass(qk2, v2, out_dtype, S, M, plan)
    return out2.reshape(orig_shape)


def pixmha_reference(inp_qk, inp_v):
    attn_wts = -inp_qk
    attn = jax.nn.softmax(attn_wts, axis=0)
    return inp_v * attn


if __name__ == "__main__":
    # PixMHA.__init__ only stores config scalars (emb_size, num_heads,
    # softmax_full_matrix); forward uses no trainable weights.
    emb_size, num_heads = 32, 4
    assert emb_size % num_heads == 0

    key = jax.random.PRNGKey(0)
    k1, k2, k3, k4, k5, k6 = jax.random.split(key, 6)

    # Main case: seq=8 frames, batch=2, channels=4, spatial 16x16 (S,B,C,H,W).
    S, B, C, H, W = 8, 2, 4, 16, 16
    inp_qk = jax.random.normal(k1, (S, B, C, H, W), dtype=jnp.float32)
    inp_v = jax.random.normal(k2, (S, B, C, H, W), dtype=jnp.float32)
    out = jax.block_until_ready(pixmha_forward(inp_qk, inp_v))
    ref = pixmha_reference(inp_qk, inp_v)
    assert out.shape == ref.shape and out.dtype == ref.dtype
    assert jnp.allclose(out, ref, atol=1e-4, rtol=1e-4), "mismatch vs reference"

    # Ragged lane axis (M = 600, not a multiple of 128): exercises the cdiv
    # grid + masked partial last block (no wrapper pad / output slice).
    qk_r = jax.random.normal(k3, (S, 2, 3, 10, 10), dtype=jnp.float32)
    v_r = jax.random.normal(k4, (S, 2, 3, 10, 10), dtype=jnp.float32)
    out_r = jax.block_until_ready(pixmha_forward(qk_r, v_r))
    ref_r = pixmha_reference(qk_r, v_r)
    assert jnp.allclose(out_r, ref_r, atol=1e-4, rtol=1e-4), "ragged-tail mismatch"

    # Large-S fallback path (online-softmax two-pass over S-tiles), forced with
    # small tiles so it is exercised at test scale: S=24 split into 8-row tiles.
    qk_l = jax.random.normal(k5, (24, 2, 4, 8, 8), dtype=jnp.float32)
    v_l = jax.random.normal(k6, (24, 2, 4, 8, 8), dtype=jnp.float32)
    out_l = jax.block_until_ready(
        pixmha_forward(qk_l, v_l, force_two_pass=True, tile_s=8))
    ref_l = pixmha_reference(qk_l, v_l)
    assert jnp.allclose(out_l, ref_l, atol=1e-4, rtol=1e-4), "two-pass mismatch"

    print("KERNEL_OK")
</pallas_src>

<mosaic_0001>
module attributes {stable_mosaic.version = 11 : i64} {
  func.func @_pixmha_fused_kernel(%arg0: i32, %arg1: memref<8x256xf32, #tpu.memory_space<vmem>>, %arg2: memref<8x256xf32, #tpu.memory_space<vmem>>, %arg3: memref<8x256xf32, #tpu.memory_space<vmem>>) attributes {dimension_semantics = [#tpu.dimension_semantics<parallel>], iteration_bounds = array<i64: 8>, scalar_prefetch = 0 : i64, scratch_operands = 0 : i64, tpu.core_type = #tpu.core_type<tc>, window_params = [{transform_indices = @transform_0, window_bounds = array<i64: 8, 256>}, {transform_indices = @transform_1, window_bounds = array<i64: 8, 256>}, {transform_indices = @transform_2, window_bounds = array<i64: 8, 256>}]} {
    %c0 = arith.constant 0 : index
    %c0_0 = arith.constant 0 : index
    %0 = vector.load %arg1[%c0, %c0_0] : memref<8x256xf32, #tpu.memory_space<vmem>>, vector<8x256xf32>
    %cst = arith.constant dense<0x7F800000> : vector<256xf32>
    %1 = vector.multi_reduction <minimumf>, %0, %cst [0] : vector<8x256xf32> to vector<256xf32>
    %2 = vector.shape_cast %1 : vector<256xf32> to vector<1x256xf32>
    %3 = vector.broadcast %2 : vector<1x256xf32> to vector<8x256xf32>
    %4 = arith.subf %3, %0 : vector<8x256xf32>
    %5 = math.exp %4 : vector<8x256xf32>
    %cst_1 = arith.constant dense<0.000000e+00> : vector<256xf32>
    %6 = vector.multi_reduction <add>, %5, %cst_1 [0] : vector<8x256xf32> to vector<256xf32>
    %7 = vector.shape_cast %6 : vector<256xf32> to vector<1x256xf32>
    %8 = tpu.reciprocal %7 : vector<1x256xf32> -> vector<1x256xf32>
    %c0_2 = arith.constant 0 : index
    %c0_3 = arith.constant 0 : index
    %9 = vector.load %arg2[%c0_2, %c0_3] : memref<8x256xf32, #tpu.memory_space<vmem>>, vector<8x256xf32>
    %10 = arith.mulf %9, %5 : vector<8x256xf32>
    %11 = vector.broadcast %8 : vector<1x256xf32> to vector<8x256xf32>
    %12 = arith.mulf %10, %11 : vector<8x256xf32>
    %c0_4 = arith.constant 0 : index
    %c0_5 = arith.constant 0 : index
    %13 = vector.load %arg3[%c0_4, %c0_5] : memref<8x256xf32, #tpu.memory_space<vmem>>, vector<8x256xf32>
    tpu.vector_store %arg3[%c0_4, %c0_5], %12 {strides = array<i32>} : memref<8x256xf32, #tpu.memory_space<vmem>>, vector<8x256xf32>,
    return
  }
  func.func @transform_0(%arg0: i32) -> (i32, i32) {
    %c0_i32 = arith.constant 0 : i32
    %c0_i32_0 = arith.constant 0 : i32
    return %c0_i32, %arg0 : i32, i32
  }
  func.func @transform_1(%arg0: i32) -> (i32, i32) {
    %c0_i32 = arith.constant 0 : i32
    %c0_i32_0 = arith.constant 0 : i32
    return %c0_i32, %arg0 : i32, i32
  }
  func.func @transform_2(%arg0: i32) -> (i32, i32) {
    %c0_i32 = arith.constant 0 : i32
    %c0_i32_0 = arith.constant 0 : i32
    return %c0_i32, %arg0 : i32, i32
  }
}

</mosaic_0001>

<bundles_post_ra>
// kernel: tpu_custom_call.1
= control target key start
LH: loop header
LB: loop body
LE: loop exit
PB: predicated region body
PF: predicated region fallthrough
CT: control target
= control target key end

     0   :  { %7 = vsyncpa [#allocation3], 0  ;;  %s797_s0 = inlined_call_operand.hbm [shape: f32[8,2048], index: 0, kind: input, shape index: {}]   ;;  %s798_s1 = inlined_call_operand.hbm [shape: f32[8,2048], index: 1, kind: input, shape index: {}]   ;;  %s799_s2 = inlined_call_operand.hbm [shape: f32[8,2048], index: 2, kind: output, shape index: {}]  }
   0x1   :  { %9 = vsyncpa [#allocation3 + $0x1], 0 }
   0x2   :  { %10 = vsyncpa [#allocation6], 0 }
   0x3   :  { %12 = vsyncpa [#allocation6 + $0x1], 0 }
   0x4   :  { %13 = vsyncpa [#allocation4], 0 }
   0x5   :  { %15 = vsyncpa [#allocation4 + $0x1], 0  ;;  %s581_s9 = smov 0   ;;  %s583_s10 = smov 0  }
   0x6   :  { %s585_s11 = smov 0   ;;  %s587_s12 = smov 0  }
   0x7 LB: > { %s602_s13 = sadd.s32 4294967295, %s561_s12   ;;  %s351_s14 = sadd.s32 4294967294, %s561_s12   ;;  %s561_s12 = sphi %s587_s12, %s817_s12   ;;  %s557_s11 = sphi %s585_s11, %s816_s11   ;;  %s553_s10 = sphi %s583_s10, %s815_s10   ;;  %s549_s9 = sphi %s581_s9, %s814_s9  }
   0x8   : > { %s606_s15 = sadd.s32 1, %s561_s12   ;;  %s28_s16 = sadd.s32 1, %s557_s11 }
   0x9   : > { %s25_s17 = ssub.s32 %s561_s12, %s606_s15  ;;  %p35_p0 = scmp.ne.s32.totalorder %s557_s11, %s553_s10 }
   0xa   : > { %p26_p1 = scmp.eq.s32.totalorder %s25_s17, 0  ;;  %p36_p2 = scmp.eq.s32.totalorder %s561_s12, 0 }
   0xb   : > { %p41_p3 = scmp.ne.s32.totalorder %s553_s10, %s549_s9  ;;  %p42_p4 = scmp.eq.s32.totalorder %s602_s13, 0 }
   0xc   : > { %s618_s18 = scalar_select %p26_p1, %s557_s11, %s28_s16  }
   0xd   : > { %p620_p5 = por %p36_p2, %p35_p0  ;;  %p624_p6 = por %p42_p4, %p41_p3 }
   0xe   : > { %p91_p7 = scmp.eq.s32.totalorder %s602_s13, 7  ;;  %p97_p8 = scmp.eq.s32.totalorder %s351_s14, 7 }
   0xf   : > { %s803_s20 = scalar_select %p624_p6, 1, 0 }
  0x10   : > { %p389_p9 = scmp.lt.s32.totalorder %s561_s12, 8  ;;  %p630_p10 = por %p91_p7, %p35_p0 }
  0x11   : > { %p634_p11 = por %p97_p8, %p41_p3  ;;  %s639_s23 = sand.u32 1, %s557_s11  }
  0x12   : > { %s804_s21 = scalar_select %p630_p10, 1, 0 }
  0x13   : > { %s805_s22 = scalar_select %p634_p11, 1, 0 }
  0x14   : > { %s369_s24 = sshll.u32 %s561_s12, 8  ;;  %s354_s25 = sshll.u32 %s639_s23, 4 }
  0x15   : > { %s648_s28 = scalar_lea.hbm %s797_s0, %s369_s24  ;;  %s121_s29 = scalar_lea.vmem [#allocation2], %s354_s25 }
  0x16   : > { %s129_s30 = sshll.u32 %s121_s29, 4  ;;  %p654_p12 = pnand %p389_p9, %p620_p5  ;;  %s658_s30 = int_to_ptr.vmem [resolvable:$true] %s129_s30 }
  0x17   : > { %s118_s4 = scalar_lea.sflag [#allocation3], %s639_s23  ;;  %s431_s5 = scalar_lea.hbm %s648_s28, 256 }
  0x18   : > { %p432_p1 = scmp.ne.s32.totalorder %s648_s28, %s431_s5  ;;  %p433_p2 = pneg %p654_p12 }
  0x19   : > { %s436_s8 = scalar_lea.hbm %s797_s0, 2048  ;;  %p437_p5 = scmp.lt.u32.totalorder %s648_s28, %s797_s0 }
  0x1a   : > { %p434_p3 = pnand %p433_p2, %p432_p1  ;;  %p438_p7 = scmp.lt.u32.totalorder %s436_s8, %s431_s5 }
  0x1b   : > { %p440_p9 = scmp.lt.u32.totalorder %s431_s5, %s648_s28 }
  0x1c   : > { %p435_p4 = pneg %p434_p3  ;;  %p439_p8 = por %p438_p7, %p437_p5 }
  0x1e   : > { %p441_p13 = por %p440_p9, %p439_p8 }
  0x20   : > { %p442_p0 = pnand %p441_p13, %p435_p4 }
  0x22   : > { %445 = shalt.err (!%p442_p0)
}
  0x23   : > { %s446_s17 = scalar_lea.vmem %s658_s30, 256  ;;  %s563_s19 = smov [#allocation2]  }
  0x24   : > { %p447_p1 = scmp.ne.s32.totalorder %s658_s30, %s446_s17  ;;  %s451_s26 = sshll.u32 %s563_s19, 4  ;;  %s452_s26 = int_to_ptr.vmem [resolvable:$false] %s451_s26 }
  0x25   : > { %s453_s27 = scalar_lea.vmem %s452_s26, 512  ;;  %p454_p10 = scmp.lt.s32.totalorder %s658_s30, %s452_s26 }
  0x26   : > { %p449_p3 = pnand %p447_p1, %p433_p2  ;;  %p455_p5 = scmp.lt.s32.totalorder %s453_s27, %s446_s17 }
  0x28   : > { %p450_p11 = pneg %p449_p3  ;;  %p456_p7 = por %p455_p5, %p454_p10 }
  0x2a   : > { %p457_p8 = pnand %p456_p7, %p450_p11 }
  0x2c   : > { %460 = shalt.err (!%p457_p8)
}
  0x2d   : > { %381 = dma.hbm_to_vmem [thread:$0]  (!%p654_p12), %s648_s28, 256, %s658_s30, %s118_s4  }
  0x2e   : > { %p807_p13 = scmp.lt.s32.totalorder %s561_s12, 9  ;;  %p808_p0 = scmp.ge.s32.totalorder %s561_s12, 1 }
  0x2f   : > { %s701_s7 = scalar_lea.hbm %s798_s1, %s369_s24  ;;  %s140_s8 = scalar_lea.vmem [#allocation5], %s354_s25 }
  0x30   : > { %p692_p4 = pnand %p808_p0, %p807_p13  ;;  %s148_s14 = sshll.u32 %s140_s8, 4  ;;  %s149_s14 = int_to_ptr.vmem [resolvable:$true] %s148_s14 }
  0x31   : > { %s137_s28 = scalar_lea.sflag [#allocation6], %s639_s23  ;;  %s461_s30 = scalar_lea.hbm %s701_s7, 256 }
  0x32   : > { %s809_s29 = scalar_select %p692_p4, 1, 0 }
  0x33   : > { %p462_p10 = scmp.ne.s32.totalorder %s701_s7, %s461_s30  ;;  %s466_s24 = scalar_lea.hbm %s798_s1, 2048 }
  0x34   : > { %p467_p1 = scmp.lt.u32.totalorder %s701_s7, %s798_s1  ;;  %p468_p3 = scmp.lt.u32.totalorder %s466_s24, %s461_s30 }
  0x35   : > { %p464_p11 = pnand %p462_p10, %p433_p2  ;;  %p470_p7 = scmp.lt.u32.totalorder %s461_s30, %s701_s7 }
  0x36   : > { %p469_p5 = por %p468_p3, %p467_p1 }
  0x37   : > { %p465_p9 = pneg %p464_p11 }
  0x38   : > { %p471_p8 = por %p470_p7, %p469_p5 }
  0x3a   : > { %p472_p13 = pnand %p471_p8, %p465_p9 }
  0x3c   : > { %475 = shalt.err (!%p472_p13)
}
  0x3d   : > { %s476_s23 = scalar_lea.vmem %s149_s14, 256  ;;  %s564_s25 = smov [#allocation5]  }
  0x3e   : > { %p477_p0 = scmp.ne.s32.totalorder %s149_s14, %s476_s23  ;;  %s481_s26 = sshll.u32 %s564_s25, 4  ;;  %s482_s26 = int_to_ptr.vmem [resolvable:$false] %s481_s26 }
  0x3f   : > { %s483_s27 = scalar_lea.vmem %s482_s26, 512  ;;  %p484_p6 = scmp.lt.s32.totalorder %s149_s14, %s482_s26 }
  0x40   : > { %p479_p10 = pnand %p477_p0, %p433_p2  ;;  %p485_p4 = scmp.lt.s32.totalorder %s483_s27, %s476_s23 }
  0x42   : > { %p480_p11 = pneg %p479_p10  ;;  %p486_p1 = por %p485_p4, %p484_p6 }
  0x44   : > { %p487_p3 = pnand %p486_p1, %p480_p11 }
  0x46   : > { %490 = shalt.err (!%p487_p3)
}
  0x47   : > { %384 = dma.hbm_to_vmem [thread:$0]  (!%p654_p12), %s701_s7, 256, %s149_s14, %s137_s28  }
  0x48   : > { %p810_p9 = scmp.ne.s32.totalorder %s809_s29, 0 }
  0x49   : > { %s728_s5 = sand.u32 (!%p810_p9), 1, %s553_s10   ;;  %p811_p6 = scmp.ne.s32.totalorder (!%p810_p9), %s803_s20, 0 }
  0x4a   : > { %157 = sbr.rel (%p810_p9) target bundleno = 152 (0x98), region = 28  ;;  %s731_s6 = sshll.u32 (!%p810_p9), %s728_s5, 4 }
  0x4b   : > { %s160_s8 = scalar_lea.sflag (!%p810_p9), [#allocation3], %s728_s5  ;;  %s163_s30 = scalar_lea.vmem (!%p810_p9), [#allocation2], %s731_s6 }
  0x51   : > { %536 = dma.done.wait (%p811_p6), %s160_s8, 256  }
  0x52   : > { %538 = vsyncadd (%p811_p6), %s160_s8, 4294967040  ;;  %s169_s3 = scalar_lea.sflag [#allocation6], %s728_s5  ;;  %s172_s29 = scalar_lea.vmem [#allocation5], %s731_s6 }
  0x53   : > { %540 = dma.done.wait (%p811_p6), %s169_s3, 256  }
  0x54   : > { %542 = vsyncadd (%p811_p6), %s169_s3, 4294967040  ;;  %v201_v0 = vld [vmem:[%s163_s30] sm:$0xff]  ;;  %v202_v1 = vld [vmem:[%s163_s30 + $0x8] sm:$0xff]  ;;  %s197_s20 = scalar_lea.vmem [#allocation7], %s731_s6  ;;  %s371_s14 = sshll.u32 %s602_s13, 8 }
  0x55   : > { %v203_v2 = vrot.slane %v201_v0, 4  ;;  %v209_v3 = vrot.slane %v202_v1, 4  ;;  %v235_v32 = vld [vmem:[%s172_s29] sm:$0xff]  ;;  %v236_v33 = vld [vmem:[%s172_s29 + $0x8] sm:$0xff]  ;;  %s258_s7 = sshll.u32 %s197_s20, 4  ;;  %s756_s16 = scalar_lea.hbm %s799_s2, %s371_s14  ;;  %s751_s7 = int_to_ptr.vmem [resolvable:$true] %s258_s7 }
  0x56   : > { %s244_s24 = scalar_lea.sflag [#allocation4], %s728_s5  ;;  %s491_s17 = scalar_lea.vmem %s751_s7, 256 }
  0x57   : > { %v204_v4 = vmin.f32 %v201_v0, %v203_v2  ;;  %v210_v5 = vmin.f32 %v202_v1, %v209_v3  ;;  %p492_p12 = scmp.ne.s32.totalorder %s751_s7, %s491_s17  ;;  %p812_p2 = scmp.ne.s32.totalorder %s804_s21, 0 }
  0x58   : > { %s565_s13 = smov [#allocation7]  }
  0x59   : > { %v205_v6 = vrot.slane %v204_v4, 2  ;;  %v211_v7 = vrot.slane %v210_v5, 2  ;;  %p493_p4 = pnand %p492_p12, %p812_p2  ;;  %s495_s19 = sshll.u32 %s565_s13, 4  ;;  %s496_s19 = int_to_ptr.vmem [resolvable:$false] %s495_s19 }
  0x5a   : > { %s497_s23 = scalar_lea.vmem %s496_s19, 512  ;;  %p498_p7 = scmp.lt.s32.totalorder %s751_s7, %s496_s19 }
  0x5b   : > { %v206_v8 = vmin.f32 %v204_v4, %v205_v6  ;;  %v212_v9 = vmin.f32 %v210_v5, %v211_v7  ;;  %p494_p5 = pneg %p493_p4  ;;  %p499_p8 = scmp.lt.s32.totalorder %s497_s23, %s491_s17 }
  0x5d   : > { %v207_v10 = vrot.slane %v206_v8, 1  ;;  %v213_v11 = vrot.slane %v212_v9, 1  ;;  %p500_p13 = por %p499_p8, %p498_p7 }
  0x5f   : > { %v208_v12 = vmin.f32 %v206_v8, %v207_v10  ;;  %v214_v13 = vmin.f32 %v212_v9, %v213_v11  ;;  %p501_p0 = pnand %p500_p13, %p494_p5 }
  0x61   : > { %v215_v14 = vsub.f32 %v208_v12, %v201_v0  ;;  %v216_v15 = vsub.f32 %v214_v13, %v202_v1 }
  0x63   : > { %v217_v16 = vmul.f32 1.442695, %v215_v14  ;;  %v219_v17 = vmul.f32 1.442695, %v216_v15 }
  0x65   : > { %423 = vpow2.f32 %v217_v16 }
  0x66   : > { %425 = vpow2.f32 %v219_v17 }
  0x6f   : > { %v424_v18 = vpop.eup %423 }
  0x70   : > { %v426_v19 = vpop.eup %425  ;;  %v221_v20 = vrot.slane %v424_v18, 4  ;;  %v237_v34 = vmul.f32 %v424_v18, %v235_v32 }
  0x71   : > { %v227_v21 = vrot.slane %v426_v19, 4  ;;  %v238_v35 = vmul.f32 %v426_v19, %v236_v33 }
  0x72   : > { %v222_v22 = vadd.f32 %v424_v18, %v221_v20 }
  0x73   : > { %v228_v23 = vadd.f32 %v426_v19, %v227_v21 }
  0x74   : > { %v223_v24 = vrot.slane %v222_v22, 2 }
  0x75   : > { %v229_v25 = vrot.slane %v228_v23, 2 }
  0x76   : > { %v224_v26 = vadd.f32 %v223_v24, %v222_v22 }
  0x77   : > { %v230_v27 = vadd.f32 %v229_v25, %v228_v23 }
  0x78   : > { %v225_v28 = vrot.slane %v224_v26, 1 }
  0x79   : > { %v231_v29 = vrot.slane %v230_v27, 1 }
  0x7a   : > { %v226_v30 = vadd.f32 %v225_v28, %v224_v26 }
  0x7b   : > { %v232_v31 = vadd.f32 %v231_v29, %v230_v27 }
  0x7c   : > { %427 = vrcp.f32 %v226_v30 }
  0x7d   : > { %429 = vrcp.f32 %v232_v31 }
  0x86   : > { %v428_v36 = vpop.eup %427 }
  0x87   : > { %v430_v37 = vpop.eup %429  ;;  %v239_v38 = vmul.f32 %v428_v36, %v237_v34 }
  0x88   : > { %v240_v39 = vmul.f32 %v430_v37, %v238_v35 }
  0x89   : > { %241 = vst [vmem:[%s197_s20] sm:$0xff] %v239_v38 }
  0x8a   : > { %242 = vst [vmem:[%s197_s20 + $0x8] sm:$0xff] %v240_v39 }
  0x8b   : > { %504 = shalt.err (!%p501_p0)
}
  0x8c   : > { %s505_s25 = scalar_lea.hbm %s756_s16, 256  ;;  %s509_s5 = scalar_lea.hbm %s799_s2, 2048 }
  0x8d   : > { %p506_p10 = scmp.ne.s32.totalorder %s756_s16, %s505_s25  ;;  %p510_p3 = scmp.lt.u32.totalorder %s756_s16, %s799_s2 }
  0x8e   : > { %p511_p9 = scmp.lt.u32.totalorder %s509_s5, %s505_s25  ;;  %p513_p12 = scmp.lt.u32.totalorder %s505_s25, %s756_s16 }
  0x8f   : > { %p507_p11 = pnand %p506_p10, %p812_p2 }
  0x90   : > { %p512_p6 = por %p511_p9, %p510_p3 }
  0x91   : > { %p508_p1 = pneg %p507_p11 }
  0x92   : > { %p514_p4 = por %p513_p12, %p512_p6 }
  0x94   : > { %p515_p5 = pnand %p514_p4, %p508_p1 }
  0x96   : > { %518 = shalt.err (!%p515_p5)
}
  0x97   : > { %376 = dma.vmem_to_hbm [thread:$0]  (%p812_p2), %s751_s7, 256, %s756_s16, %s244_s24  }
  0x98 PF: > { %p390_p7 = scmp.ge.s32.totalorder %s561_s12, 2  ;;  %s270_s30 = sand.u32 1, %s549_s9  }
  0x99   : > { %p813_p8 = scmp.ne.s32.totalorder %s805_s22, 0  ;;  %s271_s3 = scalar_lea.sflag [#allocation4], %s270_s30 }
  0x9b   : > { %p386_p13 = pnand %p390_p7, %p813_p8 }
  0x9d   : > { %544 = dma.done.wait (!%p386_p13), %s271_s3, 256  }
  0x9e   : > { %546 = vsyncadd (!%p386_p13), %s271_s3, 4294967040  ;;  %p18_p0 = scmp.ge.s32.totalorder %s606_s15, 10   ;;  %s814_s9 = smov %s553_s10 }
  0x9f   : > { %s815_s10 = smov %s557_s11  ;;  %s816_s11 = smov %s618_s18 }
  0xa0   : > { %s817_s12 = smov %s606_s15  ;;  %20 = sbr.rel (!%p18_p0) target bundleno = 7 (0x7), region = 86 }
  0xa7   :  { %276 = vsyncpa [#allocation3], 1 }
  0xa8   :  { %278 = vsyncpa [#allocation3 + $0x1], 1 }
  0xa9   :  { %279 = vsyncpa [#allocation6], 1 }
  0xaa   :  { %281 = vsyncpa [#allocation6 + $0x1], 1 }
  0xab   :  { %282 = vsyncpa [#allocation4], 1 }
  0xac   :  { %284 = vsyncpa [#allocation4 + $0x1], 1 }

</bundles_post_ra>
